<compile_context>
chip_gen: v5e
topology: v5e:2x2
jax: 0.10.0
libtpu: 0.0.40
codegen_flags: <defaults>
</compile_context>

<pallas_src>
import functools
import math

import jax
import jax.numpy as jnp
from jax import lax
from jax.experimental import pallas as pl
from jax.experimental.pallas import tpu as pltpu

LAYER_SIZES = [4, 4, 4, 4, 4, 4]
NUM_LINEAR = 6            # 1 standardization linear + 5 from the loop
NEG_SLOPE = 0.03
FEATURES = LAYER_SIZES[0]

LANES = 128               # vreg lane width
CHUNK_SUBLANES = 32       # rows per register-resident chunk (4 vregs per feature slab)


def _cdiv(a, b):
    return -(-a // b)


def _round_up(a, m):
    return _cdiv(a, m) * m


def _fit_torch_kernel(w_ref, b_ref, x_ref, o_ref, *, num_layers, features,
                      chunk, num_full_chunks, tail):
    """One lane-dense row tile through the folded MLP, pure VPU.

    w_ref : SMEM (num_layers*features*features,) f32  torch layout W[l, out, in], flattened
    b_ref : SMEM (num_layers*features,)          f32  b[l, out], flattened
    x_ref : VMEM (features, tile_rows, 128)      f32  feature-major row tile
    o_ref : VMEM (features, tile_rows, 128)      f32
    """
    # Hoist every weight/bias scalar out of the chunk loop: one SMEM read each per grid
    # step, then reused as scalar-splat operands by the VPU FMAs below.
    w = [[[w_ref[(l * features + of) * features + inf] for inf in range(features)]
          for of in range(features)] for l in range(num_layers)]
    b = [[b_ref[l * features + of] for of in range(features)]
         for l in range(num_layers)]

    def mlp_rows(row0, rows):
        # (rows, 128) slab per feature; rows <= 32 -> <= 4 vregs per slab, so the whole
        # layer chain (~40 live vregs at peak) stays in registers, no VMEM spills.
        h = [x_ref[f, pl.ds(row0, rows), :] for f in range(features)]
        for l in range(num_layers):                      # static unroll, tiny trip count
            new_h = []
            for of in range(features):
                # torch.nn.Linear: y[of] = sum_in W[of, in] * h[in] + b[of]
                acc = h[0] * w[l][of][0]
                for inf in range(1, features):
                    acc = acc + h[inf] * w[l][of][inf]
                acc = acc + b[l][of]
                if l < num_layers - 1:                   # LeakyReLU after all folded layers but the last
                    acc = jnp.maximum(acc, NEG_SLOPE * acc)
                new_h.append(acc)
            h = new_h
        for f in range(features):
            o_ref[f, pl.ds(row0, rows), :] = h[f]

    if num_full_chunks > 0:
        def body(c, carry):
            mlp_rows(pl.multiple_of(c * chunk, chunk), chunk)
            return carry
        lax.fori_loop(0, num_full_chunks, body, 0)
    if tail > 0:
        # Static start / static size tail chunk (tile need not be a multiple of `chunk`).
        mlp_rows(num_full_chunks * chunk, tail)


def _fold_standardization(weights, biases):
    """Fold the activation-free standardization linear (layer 0) into layer 1. Exact."""
    hi = jax.lax.Precision.HIGHEST
    w01 = jnp.einsum("ij,jk->ik", weights[1], weights[0], precision=hi)
    b01 = jnp.einsum("ij,j->i", weights[1], biases[0], precision=hi) + biases[1]
    w = jnp.concatenate([w01[None], weights[2:]], axis=0)
    b = jnp.concatenate([b01[None], biases[2:]], axis=0)
    return w, b


def _plan_tiles(n, max_tile_rows):
    """Pick (tile_sublanes, grid_steps, full_chunks, tail_sublanes) for n data rows."""
    needed = _round_up(max(1, _cdiv(n, LANES)), 8)        # sublane-rows, multiple of 8
    grid_steps = max(1, _cdiv(needed, max_tile_rows))
    if grid_steps == 1 and needed >= 2 * CHUNK_SUBLANES:
        grid_steps = 2                                    # keep both v7x TensorCores busy
    tile = _round_up(_cdiv(needed, grid_steps), 8)        # sized to the need -> low pad waste
    grid_steps = _cdiv(needed, tile)
    num_full = tile // CHUNK_SUBLANES
    tail = tile - num_full * CHUNK_SUBLANES
    return tile, grid_steps, num_full, tail


def fit_torch_forward_feature_major(x_fm, weights, biases, *, max_tile_rows=512):
    """Forward pass on a feature-major input.

    x_fm: (F, N); weights: (L, F, F) torch layout; biases: (L, F). Returns (F, N) f32 math.
    Callers that keep descriptors feature-major avoid the row-major relayout entirely.
    """
    f, n = x_fm.shape
    l = weights.shape[0]
    assert weights.shape == (l, f, f), weights.shape
    assert biases.shape == (l, f), biases.shape
    assert l >= 2

    w_fold, b_fold = _fold_standardization(weights.astype(jnp.float32),
                                           biases.astype(jnp.float32))
    num_layers = l - 1

    tile, grid_steps, num_full, tail = _plan_tiles(n, max_tile_rows)
    r = grid_steps * tile
    n_pad = r * LANES

    x_p = jnp.pad(x_fm.astype(jnp.float32), ((0, 0), (0, n_pad - n)))
    x_t = x_p.reshape(f, r, LANES)                        # (F, R, 128) lane-dense

    w_flat = w_fold.reshape(-1)                           # (L'*F*F,) -> SMEM scalars
    b_flat = b_fold.reshape(-1)                           # (L'*F,)   -> SMEM scalars

    kernel = functools.partial(
        _fit_torch_kernel, num_layers=num_layers, features=f,
        chunk=CHUNK_SUBLANES, num_full_chunks=num_full, tail=tail)

    flops_per_row = num_layers * f * 2 * f + (num_layers - 1) * f * 2
    cost = pl.CostEstimate(flops=flops_per_row * n, transcendentals=0,
                           bytes_accessed=2 * n * f * 4)

    out_t = pl.pallas_call(
        kernel,
        out_shape=jax.ShapeDtypeStruct((f, r, LANES), jnp.float32),
        grid=(grid_steps,),
        in_specs=[
            pl.BlockSpec(memory_space=pltpu.MemorySpace.SMEM),   # weights (<=320 B scalars)
            pl.BlockSpec(memory_space=pltpu.MemorySpace.SMEM),   # biases  (<=80 B scalars)
            pl.BlockSpec((f, tile, LANES), lambda i: (0, i, 0)),
        ],
        out_specs=pl.BlockSpec((f, tile, LANES), lambda i: (0, i, 0)),
        compiler_params=pltpu.CompilerParams(
            dimension_semantics=("parallel",),
        ),
        cost_estimate=cost,
    )(w_flat, b_flat, x_t)

    out = out_t.reshape(f, n_pad)[:, :n]
    return out.astype(x_fm.dtype)


def fit_torch_forward(x, weights, biases, *, max_tile_rows=512):
    """FitTorch forward: x (N, F) -> (N, F), matching the torch Sequential."""
    # TODO(synk): the (N,F) <-> feature-major relayout below is one fused XLA copy each
    # way; callers able to hold data feature-major should call
    # fit_torch_forward_feature_major directly and skip it.
    out_fm = fit_torch_forward_feature_major(
        x.T, weights, biases, max_tile_rows=max_tile_rows)
    return out_fm.T.astype(x.dtype)


def _reference_forward(x, weights, biases):
    """Pure-JAX reference mirroring the original (unfolded) torch Sequential, exact f32."""
    hi = jax.lax.Precision.HIGHEST
    h = x.astype(jnp.float32)
    num_layers = weights.shape[0]
    for l in range(num_layers):
        h = jnp.einsum("nf,gf->ng", h, weights[l], precision=hi) + biases[l]
        if 1 <= l <= num_layers - 2:
            h = jnp.where(h > 0, h, NEG_SLOPE * h)
    return h.astype(x.dtype)


if __name__ == "__main__":
    key = jax.random.PRNGKey(0)
    keys = jax.random.split(key, 1 + 2 * NUM_LINEAR)
    k_x, k_params = keys[0], keys[1:]

    # Deterministic init mimicking torch.nn.Linear default: U(-1/sqrt(fan_in), +1/sqrt(fan_in))
    bound = 1.0 / math.sqrt(FEATURES)
    w_list, b_list = [], []
    for li in range(NUM_LINEAR):
        w_list.append(jax.random.uniform(
            k_params[2 * li], (FEATURES, FEATURES), jnp.float32, -bound, bound))
        b_list.append(jax.random.uniform(
            k_params[2 * li + 1], (FEATURES,), jnp.float32, -bound, bound))
    weights = jnp.stack(w_list)   # (6, 4, 4)
    biases = jnp.stack(b_list)    # (6, 4)

    # Small case: single grid step, tail-only chunk, exercises the padding path.
    n_small = 200
    x_small = jax.random.normal(k_x, (n_small, FEATURES), dtype=jnp.float32)
    out_small = jax.block_until_ready(fit_torch_forward(x_small, weights, biases))
    ref_small = _reference_forward(x_small, weights, biases)
    assert out_small.shape == (n_small, FEATURES)
    assert jnp.allclose(out_small, ref_small, atol=1e-5, rtol=1e-5), "small-N mismatch"

    # Larger case: >=2 grid steps plus the in-kernel register-chunk loop.
    n_big = 70_000
    x_big = jax.random.normal(jax.random.PRNGKey(1), (n_big, FEATURES), dtype=jnp.float32)
    out_big = jax.block_until_ready(fit_torch_forward(x_big, weights, biases))
    ref_big = _reference_forward(x_big, weights, biases)
    assert out_big.shape == (n_big, FEATURES)
    assert jnp.allclose(out_big, ref_big, atol=1e-5, rtol=1e-5), "large-N mismatch"

    print("KERNEL_OK")
</pallas_src>

<mosaic_0001>
module attributes {stable_mosaic.version = 11 : i64} {
  func.func @_fit_torch_kernel(%arg0: i32, %arg1: memref<80xf32, #tpu.memory_space<smem>>, %arg2: memref<20xf32, #tpu.memory_space<smem>>, %arg3: memref<4x8x128xf32, #tpu.memory_space<vmem>>, %arg4: memref<4x8x128xf32, #tpu.memory_space<vmem>>) attributes {dimension_semantics = [#tpu.dimension_semantics<parallel>], iteration_bounds = array<i64: 1>, scalar_prefetch = 0 : i64, scratch_operands = 0 : i64, tpu.core_type = #tpu.core_type<tc>, window_params = [{transform_indices = @transform_0, window_bounds = array<i64: 80>}, {transform_indices = @transform_1, window_bounds = array<i64: 20>}, {transform_indices = @transform_2, window_bounds = array<i64: 4, 8, 128>}, {transform_indices = @transform_3, window_bounds = array<i64: 4, 8, 128>}]} {
    %c0 = arith.constant 0 : index
    %0 = memref.load %arg1[%c0] : memref<80xf32, #tpu.memory_space<smem>>
    %c1 = arith.constant 1 : index
    %1 = memref.load %arg1[%c1] : memref<80xf32, #tpu.memory_space<smem>>
    %c2 = arith.constant 2 : index
    %2 = memref.load %arg1[%c2] : memref<80xf32, #tpu.memory_space<smem>>
    %c3 = arith.constant 3 : index
    %3 = memref.load %arg1[%c3] : memref<80xf32, #tpu.memory_space<smem>>
    %c4 = arith.constant 4 : index
    %4 = memref.load %arg1[%c4] : memref<80xf32, #tpu.memory_space<smem>>
    %c5 = arith.constant 5 : index
    %5 = memref.load %arg1[%c5] : memref<80xf32, #tpu.memory_space<smem>>
    %c6 = arith.constant 6 : index
    %6 = memref.load %arg1[%c6] : memref<80xf32, #tpu.memory_space<smem>>
    %c7 = arith.constant 7 : index
    %7 = memref.load %arg1[%c7] : memref<80xf32, #tpu.memory_space<smem>>
    %c8 = arith.constant 8 : index
    %8 = memref.load %arg1[%c8] : memref<80xf32, #tpu.memory_space<smem>>
    %c9 = arith.constant 9 : index
    %9 = memref.load %arg1[%c9] : memref<80xf32, #tpu.memory_space<smem>>
    %c10 = arith.constant 10 : index
    %10 = memref.load %arg1[%c10] : memref<80xf32, #tpu.memory_space<smem>>
    %c11 = arith.constant 11 : index
    %11 = memref.load %arg1[%c11] : memref<80xf32, #tpu.memory_space<smem>>
    %c12 = arith.constant 12 : index
    %12 = memref.load %arg1[%c12] : memref<80xf32, #tpu.memory_space<smem>>
    %c13 = arith.constant 13 : index
    %13 = memref.load %arg1[%c13] : memref<80xf32, #tpu.memory_space<smem>>
    %c14 = arith.constant 14 : index
    %14 = memref.load %arg1[%c14] : memref<80xf32, #tpu.memory_space<smem>>
    %c15 = arith.constant 15 : index
    %15 = memref.load %arg1[%c15] : memref<80xf32, #tpu.memory_space<smem>>
    %c16 = arith.constant 16 : index
    %16 = memref.load %arg1[%c16] : memref<80xf32, #tpu.memory_space<smem>>
    %c17 = arith.constant 17 : index
    %17 = memref.load %arg1[%c17] : memref<80xf32, #tpu.memory_space<smem>>
    %c18 = arith.constant 18 : index
    %18 = memref.load %arg1[%c18] : memref<80xf32, #tpu.memory_space<smem>>
    %c19 = arith.constant 19 : index
    %19 = memref.load %arg1[%c19] : memref<80xf32, #tpu.memory_space<smem>>
    %c20 = arith.constant 20 : index
    %20 = memref.load %arg1[%c20] : memref<80xf32, #tpu.memory_space<smem>>
    %c21 = arith.constant 21 : index
    %21 = memref.load %arg1[%c21] : memref<80xf32, #tpu.memory_space<smem>>
    %c22 = arith.constant 22 : index
    %22 = memref.load %arg1[%c22] : memref<80xf32, #tpu.memory_space<smem>>
    %c23 = arith.constant 23 : index
    %23 = memref.load %arg1[%c23] : memref<80xf32, #tpu.memory_space<smem>>
    %c24 = arith.constant 24 : index
    %24 = memref.load %arg1[%c24] : memref<80xf32, #tpu.memory_space<smem>>
    %c25 = arith.constant 25 : index
    %25 = memref.load %arg1[%c25] : memref<80xf32, #tpu.memory_space<smem>>
    %c26 = arith.constant 26 : index
    %26 = memref.load %arg1[%c26] : memref<80xf32, #tpu.memory_space<smem>>
    %c27 = arith.constant 27 : index
    %27 = memref.load %arg1[%c27] : memref<80xf32, #tpu.memory_space<smem>>
    %c28 = arith.constant 28 : index
    %28 = memref.load %arg1[%c28] : memref<80xf32, #tpu.memory_space<smem>>
    %c29 = arith.constant 29 : index
    %29 = memref.load %arg1[%c29] : memref<80xf32, #tpu.memory_space<smem>>
    %c30 = arith.constant 30 : index
    %30 = memref.load %arg1[%c30] : memref<80xf32, #tpu.memory_space<smem>>
    %c31 = arith.constant 31 : index
    %31 = memref.load %arg1[%c31] : memref<80xf32, #tpu.memory_space<smem>>
    %c32 = arith.constant 32 : index
    %32 = memref.load %arg1[%c32] : memref<80xf32, #tpu.memory_space<smem>>
    %c33 = arith.constant 33 : index
    %33 = memref.load %arg1[%c33] : memref<80xf32, #tpu.memory_space<smem>>
    %c34 = arith.constant 34 : index
    %34 = memref.load %arg1[%c34] : memref<80xf32, #tpu.memory_space<smem>>
    %c35 = arith.constant 35 : index
    %35 = memref.load %arg1[%c35] : memref<80xf32, #tpu.memory_space<smem>>
    %c36 = arith.constant 36 : index
    %36 = memref.load %arg1[%c36] : memref<80xf32, #tpu.memory_space<smem>>
    %c37 = arith.constant 37 : index
    %37 = memref.load %arg1[%c37] : memref<80xf32, #tpu.memory_space<smem>>
    %c38 = arith.constant 38 : index
    %38 = memref.load %arg1[%c38] : memref<80xf32, #tpu.memory_space<smem>>
    %c39 = arith.constant 39 : index
    %39 = memref.load %arg1[%c39] : memref<80xf32, #tpu.memory_space<smem>>
    %c40 = arith.constant 40 : index
    %40 = memref.load %arg1[%c40] : memref<80xf32, #tpu.memory_space<smem>>
    %c41 = arith.constant 41 : index
    %41 = memref.load %arg1[%c41] : memref<80xf32, #tpu.memory_space<smem>>
    %c42 = arith.constant 42 : index
    %42 = memref.load %arg1[%c42] : memref<80xf32, #tpu.memory_space<smem>>
    %c43 = arith.constant 43 : index
    %43 = memref.load %arg1[%c43] : memref<80xf32, #tpu.memory_space<smem>>
    %c44 = arith.constant 44 : index
    %44 = memref.load %arg1[%c44] : memref<80xf32, #tpu.memory_space<smem>>
    %c45 = arith.constant 45 : index
    %45 = memref.load %arg1[%c45] : memref<80xf32, #tpu.memory_space<smem>>
    %c46 = arith.constant 46 : index
    %46 = memref.load %arg1[%c46] : memref<80xf32, #tpu.memory_space<smem>>
    %c47 = arith.constant 47 : index
    %47 = memref.load %arg1[%c47] : memref<80xf32, #tpu.memory_space<smem>>
    %c48 = arith.constant 48 : index
    %48 = memref.load %arg1[%c48] : memref<80xf32, #tpu.memory_space<smem>>
    %c49 = arith.constant 49 : index
    %49 = memref.load %arg1[%c49] : memref<80xf32, #tpu.memory_space<smem>>
    %c50 = arith.constant 50 : index
    %50 = memref.load %arg1[%c50] : memref<80xf32, #tpu.memory_space<smem>>
    %c51 = arith.constant 51 : index
    %51 = memref.load %arg1[%c51] : memref<80xf32, #tpu.memory_space<smem>>
    %c52 = arith.constant 52 : index
    %52 = memref.load %arg1[%c52] : memref<80xf32, #tpu.memory_space<smem>>
    %c53 = arith.constant 53 : index
    %53 = memref.load %arg1[%c53] : memref<80xf32, #tpu.memory_space<smem>>
    %c54 = arith.constant 54 : index
    %54 = memref.load %arg1[%c54] : memref<80xf32, #tpu.memory_space<smem>>
    %c55 = arith.constant 55 : index
    %55 = memref.load %arg1[%c55] : memref<80xf32, #tpu.memory_space<smem>>
    %c56 = arith.constant 56 : index
    %56 = memref.load %arg1[%c56] : memref<80xf32, #tpu.memory_space<smem>>
    %c57 = arith.constant 57 : index
    %57 = memref.load %arg1[%c57] : memref<80xf32, #tpu.memory_space<smem>>
    %c58 = arith.constant 58 : index
    %58 = memref.load %arg1[%c58] : memref<80xf32, #tpu.memory_space<smem>>
    %c59 = arith.constant 59 : index
    %59 = memref.load %arg1[%c59] : memref<80xf32, #tpu.memory_space<smem>>
    %c60 = arith.constant 60 : index
    %60 = memref.load %arg1[%c60] : memref<80xf32, #tpu.memory_space<smem>>
    %c61 = arith.constant 61 : index
    %61 = memref.load %arg1[%c61] : memref<80xf32, #tpu.memory_space<smem>>
    %c62 = arith.constant 62 : index
    %62 = memref.load %arg1[%c62] : memref<80xf32, #tpu.memory_space<smem>>
    %c63 = arith.constant 63 : index
    %63 = memref.load %arg1[%c63] : memref<80xf32, #tpu.memory_space<smem>>
    %c64 = arith.constant 64 : index
    %64 = memref.load %arg1[%c64] : memref<80xf32, #tpu.memory_space<smem>>
    %c65 = arith.constant 65 : index
    %65 = memref.load %arg1[%c65] : memref<80xf32, #tpu.memory_space<smem>>
    %c66 = arith.constant 66 : index
    %66 = memref.load %arg1[%c66] : memref<80xf32, #tpu.memory_space<smem>>
    %c67 = arith.constant 67 : index
    %67 = memref.load %arg1[%c67] : memref<80xf32, #tpu.memory_space<smem>>
    %c68 = arith.constant 68 : index
    %68 = memref.load %arg1[%c68] : memref<80xf32, #tpu.memory_space<smem>>
    %c69 = arith.constant 69 : index
    %69 = memref.load %arg1[%c69] : memref<80xf32, #tpu.memory_space<smem>>
    %c70 = arith.constant 70 : index
    %70 = memref.load %arg1[%c70] : memref<80xf32, #tpu.memory_space<smem>>
    %c71 = arith.constant 71 : index
    %71 = memref.load %arg1[%c71] : memref<80xf32, #tpu.memory_space<smem>>
    %c72 = arith.constant 72 : index
    %72 = memref.load %arg1[%c72] : memref<80xf32, #tpu.memory_space<smem>>
    %c73 = arith.constant 73 : index
    %73 = memref.load %arg1[%c73] : memref<80xf32, #tpu.memory_space<smem>>
    %c74 = arith.constant 74 : index
    %74 = memref.load %arg1[%c74] : memref<80xf32, #tpu.memory_space<smem>>
    %c75 = arith.constant 75 : index
    %75 = memref.load %arg1[%c75] : memref<80xf32, #tpu.memory_space<smem>>
    %c76 = arith.constant 76 : index
    %76 = memref.load %arg1[%c76] : memref<80xf32, #tpu.memory_space<smem>>
    %c77 = arith.constant 77 : index
    %77 = memref.load %arg1[%c77] : memref<80xf32, #tpu.memory_space<smem>>
    %c78 = arith.constant 78 : index
    %78 = memref.load %arg1[%c78] : memref<80xf32, #tpu.memory_space<smem>>
    %c79 = arith.constant 79 : index
    %79 = memref.load %arg1[%c79] : memref<80xf32, #tpu.memory_space<smem>>
    %c0_0 = arith.constant 0 : index
    %80 = memref.load %arg2[%c0_0] : memref<20xf32, #tpu.memory_space<smem>>
    %c1_1 = arith.constant 1 : index
    %81 = memref.load %arg2[%c1_1] : memref<20xf32, #tpu.memory_space<smem>>
    %c2_2 = arith.constant 2 : index
    %82 = memref.load %arg2[%c2_2] : memref<20xf32, #tpu.memory_space<smem>>
    %c3_3 = arith.constant 3 : index
    %83 = memref.load %arg2[%c3_3] : memref<20xf32, #tpu.memory_space<smem>>
    %c4_4 = arith.constant 4 : index
    %84 = memref.load %arg2[%c4_4] : memref<20xf32, #tpu.memory_space<smem>>
    %c5_5 = arith.constant 5 : index
    %85 = memref.load %arg2[%c5_5] : memref<20xf32, #tpu.memory_space<smem>>
    %c6_6 = arith.constant 6 : index
    %86 = memref.load %arg2[%c6_6] : memref<20xf32, #tpu.memory_space<smem>>
    %c7_7 = arith.constant 7 : index
    %87 = memref.load %arg2[%c7_7] : memref<20xf32, #tpu.memory_space<smem>>
    %c8_8 = arith.constant 8 : index
    %88 = memref.load %arg2[%c8_8] : memref<20xf32, #tpu.memory_space<smem>>
    %c9_9 = arith.constant 9 : index
    %89 = memref.load %arg2[%c9_9] : memref<20xf32, #tpu.memory_space<smem>>
    %c10_10 = arith.constant 10 : index
    %90 = memref.load %arg2[%c10_10] : memref<20xf32, #tpu.memory_space<smem>>
    %c11_11 = arith.constant 11 : index
    %91 = memref.load %arg2[%c11_11] : memref<20xf32, #tpu.memory_space<smem>>
    %c12_12 = arith.constant 12 : index
    %92 = memref.load %arg2[%c12_12] : memref<20xf32, #tpu.memory_space<smem>>
    %c13_13 = arith.constant 13 : index
    %93 = memref.load %arg2[%c13_13] : memref<20xf32, #tpu.memory_space<smem>>
    %c14_14 = arith.constant 14 : index
    %94 = memref.load %arg2[%c14_14] : memref<20xf32, #tpu.memory_space<smem>>
    %c15_15 = arith.constant 15 : index
    %95 = memref.load %arg2[%c15_15] : memref<20xf32, #tpu.memory_space<smem>>
    %c16_16 = arith.constant 16 : index
    %96 = memref.load %arg2[%c16_16] : memref<20xf32, #tpu.memory_space<smem>>
    %c17_17 = arith.constant 17 : index
    %97 = memref.load %arg2[%c17_17] : memref<20xf32, #tpu.memory_space<smem>>
    %c18_18 = arith.constant 18 : index
    %98 = memref.load %arg2[%c18_18] : memref<20xf32, #tpu.memory_space<smem>>
    %c19_19 = arith.constant 19 : index
    %99 = memref.load %arg2[%c19_19] : memref<20xf32, #tpu.memory_space<smem>>
    %c0_20 = arith.constant 0 : index
    %c0_21 = arith.constant 0 : index
    %c0_22 = arith.constant 0 : index
    %100 = vector.load %arg3[%c0_20, %c0_21, %c0_22] : memref<4x8x128xf32, #tpu.memory_space<vmem>>, vector<1x8x128xf32>
    %101 = vector.shape_cast %100 : vector<1x8x128xf32> to vector<8x128xf32>
    %c1_23 = arith.constant 1 : index
    %c0_24 = arith.constant 0 : index
    %c0_25 = arith.constant 0 : index
    %102 = vector.load %arg3[%c1_23, %c0_24, %c0_25] : memref<4x8x128xf32, #tpu.memory_space<vmem>>, vector<1x8x128xf32>
    %103 = vector.shape_cast %102 : vector<1x8x128xf32> to vector<8x128xf32>
    %c2_26 = arith.constant 2 : index
    %c0_27 = arith.constant 0 : index
    %c0_28 = arith.constant 0 : index
    %104 = vector.load %arg3[%c2_26, %c0_27, %c0_28] : memref<4x8x128xf32, #tpu.memory_space<vmem>>, vector<1x8x128xf32>
    %105 = vector.shape_cast %104 : vector<1x8x128xf32> to vector<8x128xf32>
    %c3_29 = arith.constant 3 : index
    %c0_30 = arith.constant 0 : index
    %c0_31 = arith.constant 0 : index
    %106 = vector.load %arg3[%c3_29, %c0_30, %c0_31] : memref<4x8x128xf32, #tpu.memory_space<vmem>>, vector<1x8x128xf32>
    %107 = vector.shape_cast %106 : vector<1x8x128xf32> to vector<8x128xf32>
    %108 = vector.broadcast %0 : f32 to vector<8x128xf32>
    %109 = arith.mulf %101, %108 : vector<8x128xf32>
    %110 = vector.broadcast %1 : f32 to vector<8x128xf32>
    %111 = arith.mulf %103, %110 : vector<8x128xf32>
    %112 = arith.addf %109, %111 : vector<8x128xf32>
    %113 = vector.broadcast %2 : f32 to vector<8x128xf32>
    %114 = arith.mulf %105, %113 : vector<8x128xf32>
    %115 = arith.addf %112, %114 : vector<8x128xf32>
    %116 = vector.broadcast %3 : f32 to vector<8x128xf32>
    %117 = arith.mulf %107, %116 : vector<8x128xf32>
    %118 = arith.addf %115, %117 : vector<8x128xf32>
    %119 = vector.broadcast %80 : f32 to vector<8x128xf32>
    %120 = arith.addf %118, %119 : vector<8x128xf32>
    %cst = arith.constant 3.000000e-02 : f32
    %121 = vector.broadcast %cst : f32 to vector<8x128xf32>
    %122 = arith.mulf %121, %120 : vector<8x128xf32>
    %123 = arith.maximumf %120, %122 : vector<8x128xf32>
    %124 = vector.broadcast %4 : f32 to vector<8x128xf32>
    %125 = arith.mulf %101, %124 : vector<8x128xf32>
    %126 = vector.broadcast %5 : f32 to vector<8x128xf32>
    %127 = arith.mulf %103, %126 : vector<8x128xf32>
    %128 = arith.addf %125, %127 : vector<8x128xf32>
    %129 = vector.broadcast %6 : f32 to vector<8x128xf32>
    %130 = arith.mulf %105, %129 : vector<8x128xf32>
    %131 = arith.addf %128, %130 : vector<8x128xf32>
    %132 = vector.broadcast %7 : f32 to vector<8x128xf32>
    %133 = arith.mulf %107, %132 : vector<8x128xf32>
    %134 = arith.addf %131, %133 : vector<8x128xf32>
    %135 = vector.broadcast %81 : f32 to vector<8x128xf32>
    %136 = arith.addf %134, %135 : vector<8x128xf32>
    %cst_32 = arith.constant 3.000000e-02 : f32
    %137 = vector.broadcast %cst_32 : f32 to vector<8x128xf32>
    %138 = arith.mulf %137, %136 : vector<8x128xf32>
    %139 = arith.maximumf %136, %138 : vector<8x128xf32>
    %140 = vector.broadcast %8 : f32 to vector<8x128xf32>
    %141 = arith.mulf %101, %140 : vector<8x128xf32>
    %142 = vector.broadcast %9 : f32 to vector<8x128xf32>
    %143 = arith.mulf %103, %142 : vector<8x128xf32>
    %144 = arith.addf %141, %143 : vector<8x128xf32>
    %145 = vector.broadcast %10 : f32 to vector<8x128xf32>
    %146 = arith.mulf %105, %145 : vector<8x128xf32>
    %147 = arith.addf %144, %146 : vector<8x128xf32>
    %148 = vector.broadcast %11 : f32 to vector<8x128xf32>
    %149 = arith.mulf %107, %148 : vector<8x128xf32>
    %150 = arith.addf %147, %149 : vector<8x128xf32>
    %151 = vector.broadcast %82 : f32 to vector<8x128xf32>
    %152 = arith.addf %150, %151 : vector<8x128xf32>
    %cst_33 = arith.constant 3.000000e-02 : f32
    %153 = vector.broadcast %cst_33 : f32 to vector<8x128xf32>
    %154 = arith.mulf %153, %152 : vector<8x128xf32>
    %155 = arith.maximumf %152, %154 : vector<8x128xf32>
    %156 = vector.broadcast %12 : f32 to vector<8x128xf32>
    %157 = arith.mulf %101, %156 : vector<8x128xf32>
    %158 = vector.broadcast %13 : f32 to vector<8x128xf32>
    %159 = arith.mulf %103, %158 : vector<8x128xf32>
    %160 = arith.addf %157, %159 : vector<8x128xf32>
    %161 = vector.broadcast %14 : f32 to vector<8x128xf32>
    %162 = arith.mulf %105, %161 : vector<8x128xf32>
    %163 = arith.addf %160, %162 : vector<8x128xf32>
    %164 = vector.broadcast %15 : f32 to vector<8x128xf32>
    %165 = arith.mulf %107, %164 : vector<8x128xf32>
    %166 = arith.addf %163, %165 : vector<8x128xf32>
    %167 = vector.broadcast %83 : f32 to vector<8x128xf32>
    %168 = arith.addf %166, %167 : vector<8x128xf32>
    %cst_34 = arith.constant 3.000000e-02 : f32
    %169 = vector.broadcast %cst_34 : f32 to vector<8x128xf32>
    %170 = arith.mulf %169, %168 : vector<8x128xf32>
    %171 = arith.maximumf %168, %170 : vector<8x128xf32>
    %172 = vector.broadcast %16 : f32 to vector<8x128xf32>
    %173 = arith.mulf %123, %172 : vector<8x128xf32>
    %174 = vector.broadcast %17 : f32 to vector<8x128xf32>
    %175 = arith.mulf %139, %174 : vector<8x128xf32>
    %176 = arith.addf %173, %175 : vector<8x128xf32>
    %177 = vector.broadcast %18 : f32 to vector<8x128xf32>
    %178 = arith.mulf %155, %177 : vector<8x128xf32>
    %179 = arith.addf %176, %178 : vector<8x128xf32>
    %180 = vector.broadcast %19 : f32 to vector<8x128xf32>
    %181 = arith.mulf %171, %180 : vector<8x128xf32>
    %182 = arith.addf %179, %181 : vector<8x128xf32>
    %183 = vector.broadcast %84 : f32 to vector<8x128xf32>
    %184 = arith.addf %182, %183 : vector<8x128xf32>
    %cst_35 = arith.constant 3.000000e-02 : f32
    %185 = vector.broadcast %cst_35 : f32 to vector<8x128xf32>
    %186 = arith.mulf %185, %184 : vector<8x128xf32>
    %187 = arith.maximumf %184, %186 : vector<8x128xf32>
    %188 = vector.broadcast %20 : f32 to vector<8x128xf32>
    %189 = arith.mulf %123, %188 : vector<8x128xf32>
    %190 = vector.broadcast %21 : f32 to vector<8x128xf32>
    %191 = arith.mulf %139, %190 : vector<8x128xf32>
    %192 = arith.addf %189, %191 : vector<8x128xf32>
    %193 = vector.broadcast %22 : f32 to vector<8x128xf32>
    %194 = arith.mulf %155, %193 : vector<8x128xf32>
    %195 = arith.addf %192, %194 : vector<8x128xf32>
    %196 = vector.broadcast %23 : f32 to vector<8x128xf32>
    %197 = arith.mulf %171, %196 : vector<8x128xf32>
    %198 = arith.addf %195, %197 : vector<8x128xf32>
    %199 = vector.broadcast %85 : f32 to vector<8x128xf32>
    %200 = arith.addf %198, %199 : vector<8x128xf32>
    %cst_36 = arith.constant 3.000000e-02 : f32
    %201 = vector.broadcast %cst_36 : f32 to vector<8x128xf32>
    %202 = arith.mulf %201, %200 : vector<8x128xf32>
    %203 = arith.maximumf %200, %202 : vector<8x128xf32>
    %204 = vector.broadcast %24 : f32 to vector<8x128xf32>
    %205 = arith.mulf %123, %204 : vector<8x128xf32>
    %206 = vector.broadcast %25 : f32 to vector<8x128xf32>
    %207 = arith.mulf %139, %206 : vector<8x128xf32>
    %208 = arith.addf %205, %207 : vector<8x128xf32>
    %209 = vector.broadcast %26 : f32 to vector<8x128xf32>
    %210 = arith.mulf %155, %209 : vector<8x128xf32>
    %211 = arith.addf %208, %210 : vector<8x128xf32>
    %212 = vector.broadcast %27 : f32 to vector<8x128xf32>
    %213 = arith.mulf %171, %212 : vector<8x128xf32>
    %214 = arith.addf %211, %213 : vector<8x128xf32>
    %215 = vector.broadcast %86 : f32 to vector<8x128xf32>
    %216 = arith.addf %214, %215 : vector<8x128xf32>
    %cst_37 = arith.constant 3.000000e-02 : f32
    %217 = vector.broadcast %cst_37 : f32 to vector<8x128xf32>
    %218 = arith.mulf %217, %216 : vector<8x128xf32>
    %219 = arith.maximumf %216, %218 : vector<8x128xf32>
    %220 = vector.broadcast %28 : f32 to vector<8x128xf32>
    %221 = arith.mulf %123, %220 : vector<8x128xf32>
    %222 = vector.broadcast %29 : f32 to vector<8x128xf32>
    %223 = arith.mulf %139, %222 : vector<8x128xf32>
    %224 = arith.addf %221, %223 : vector<8x128xf32>
    %225 = vector.broadcast %30 : f32 to vector<8x128xf32>
    %226 = arith.mulf %155, %225 : vector<8x128xf32>
    %227 = arith.addf %224, %226 : vector<8x128xf32>
    %228 = vector.broadcast %31 : f32 to vector<8x128xf32>
    %229 = arith.mulf %171, %228 : vector<8x128xf32>
    %230 = arith.addf %227, %229 : vector<8x128xf32>
    %231 = vector.broadcast %87 : f32 to vector<8x128xf32>
    %232 = arith.addf %230, %231 : vector<8x128xf32>
    %cst_38 = arith.constant 3.000000e-02 : f32
    %233 = vector.broadcast %cst_38 : f32 to vector<8x128xf32>
    %234 = arith.mulf %233, %232 : vector<8x128xf32>
    %235 = arith.maximumf %232, %234 : vector<8x128xf32>
    %236 = vector.broadcast %32 : f32 to vector<8x128xf32>
    %237 = arith.mulf %187, %236 : vector<8x128xf32>
    %238 = vector.broadcast %33 : f32 to vector<8x128xf32>
    %239 = arith.mulf %203, %238 : vector<8x128xf32>
    %240 = arith.addf %237, %239 : vector<8x128xf32>
    %241 = vector.broadcast %34 : f32 to vector<8x128xf32>
    %242 = arith.mulf %219, %241 : vector<8x128xf32>
    %243 = arith.addf %240, %242 : vector<8x128xf32>
    %244 = vector.broadcast %35 : f32 to vector<8x128xf32>
    %245 = arith.mulf %235, %244 : vector<8x128xf32>
    %246 = arith.addf %243, %245 : vector<8x128xf32>
    %247 = vector.broadcast %88 : f32 to vector<8x128xf32>
    %248 = arith.addf %246, %247 : vector<8x128xf32>
    %cst_39 = arith.constant 3.000000e-02 : f32
    %249 = vector.broadcast %cst_39 : f32 to vector<8x128xf32>
    %250 = arith.mulf %249, %248 : vector<8x128xf32>
    %251 = arith.maximumf %248, %250 : vector<8x128xf32>
    %252 = vector.broadcast %36 : f32 to vector<8x128xf32>
    %253 = arith.mulf %187, %252 : vector<8x128xf32>
    %254 = vector.broadcast %37 : f32 to vector<8x128xf32>
    %255 = arith.mulf %203, %254 : vector<8x128xf32>
    %256 = arith.addf %253, %255 : vector<8x128xf32>
    %257 = vector.broadcast %38 : f32 to vector<8x128xf32>
    %258 = arith.mulf %219, %257 : vector<8x128xf32>
    %259 = arith.addf %256, %258 : vector<8x128xf32>
    %260 = vector.broadcast %39 : f32 to vector<8x128xf32>
    %261 = arith.mulf %235, %260 : vector<8x128xf32>
    %262 = arith.addf %259, %261 : vector<8x128xf32>
    %263 = vector.broadcast %89 : f32 to vector<8x128xf32>
    %264 = arith.addf %262, %263 : vector<8x128xf32>
    %cst_40 = arith.constant 3.000000e-02 : f32
    %265 = vector.broadcast %cst_40 : f32 to vector<8x128xf32>
    %266 = arith.mulf %265, %264 : vector<8x128xf32>
    %267 = arith.maximumf %264, %266 : vector<8x128xf32>
    %268 = vector.broadcast %40 : f32 to vector<8x128xf32>
    %269 = arith.mulf %187, %268 : vector<8x128xf32>
    %270 = vector.broadcast %41 : f32 to vector<8x128xf32>
    %271 = arith.mulf %203, %270 : vector<8x128xf32>
    %272 = arith.addf %269, %271 : vector<8x128xf32>
    %273 = vector.broadcast %42 : f32 to vector<8x128xf32>
    %274 = arith.mulf %219, %273 : vector<8x128xf32>
    %275 = arith.addf %272, %274 : vector<8x128xf32>
    %276 = vector.broadcast %43 : f32 to vector<8x128xf32>
    %277 = arith.mulf %235, %276 : vector<8x128xf32>
    %278 = arith.addf %275, %277 : vector<8x128xf32>
    %279 = vector.broadcast %90 : f32 to vector<8x128xf32>
    %280 = arith.addf %278, %279 : vector<8x128xf32>
    %cst_41 = arith.constant 3.000000e-02 : f32
    %281 = vector.broadcast %cst_41 : f32 to vector<8x128xf32>
    %282 = arith.mulf %281, %280 : vector<8x128xf32>
    %283 = arith.maximumf %280, %282 : vector<8x128xf32>
    %284 = vector.broadcast %44 : f32 to vector<8x128xf32>
    %285 = arith.mulf %187, %284 : vector<8x128xf32>
    %286 = vector.broadcast %45 : f32 to vector<8x128xf32>
    %287 = arith.mulf %203, %286 : vector<8x128xf32>
    %288 = arith.addf %285, %287 : vector<8x128xf32>
    %289 = vector.broadcast %46 : f32 to vector<8x128xf32>
    %290 = arith.mulf %219, %289 : vector<8x128xf32>
    %291 = arith.addf %288, %290 : vector<8x128xf32>
    %292 = vector.broadcast %47 : f32 to vector<8x128xf32>
    %293 = arith.mulf %235, %292 : vector<8x128xf32>
    %294 = arith.addf %291, %293 : vector<8x128xf32>
    %295 = vector.broadcast %91 : f32 to vector<8x128xf32>
    %296 = arith.addf %294, %295 : vector<8x128xf32>
    %cst_42 = arith.constant 3.000000e-02 : f32
    %297 = vector.broadcast %cst_42 : f32 to vector<8x128xf32>
    %298 = arith.mulf %297, %296 : vector<8x128xf32>
    %299 = arith.maximumf %296, %298 : vector<8x128xf32>
    %300 = vector.broadcast %48 : f32 to vector<8x128xf32>
    %301 = arith.mulf %251, %300 : vector<8x128xf32>
    %302 = vector.broadcast %49 : f32 to vector<8x128xf32>
    %303 = arith.mulf %267, %302 : vector<8x128xf32>
    %304 = arith.addf %301, %303 : vector<8x128xf32>
    %305 = vector.broadcast %50 : f32 to vector<8x128xf32>
    %306 = arith.mulf %283, %305 : vector<8x128xf32>
    %307 = arith.addf %304, %306 : vector<8x128xf32>
    %308 = vector.broadcast %51 : f32 to vector<8x128xf32>
    %309 = arith.mulf %299, %308 : vector<8x128xf32>
    %310 = arith.addf %307, %309 : vector<8x128xf32>
    %311 = vector.broadcast %92 : f32 to vector<8x128xf32>
    %312 = arith.addf %310, %311 : vector<8x128xf32>
    %cst_43 = arith.constant 3.000000e-02 : f32
    %313 = vector.broadcast %cst_43 : f32 to vector<8x128xf32>
    %314 = arith.mulf %313, %312 : vector<8x128xf32>
    %315 = arith.maximumf %312, %314 : vector<8x128xf32>
    %316 = vector.broadcast %52 : f32 to vector<8x128xf32>
    %317 = arith.mulf %251, %316 : vector<8x128xf32>
    %318 = vector.broadcast %53 : f32 to vector<8x128xf32>
    %319 = arith.mulf %267, %318 : vector<8x128xf32>
    %320 = arith.addf %317, %319 : vector<8x128xf32>
    %321 = vector.broadcast %54 : f32 to vector<8x128xf32>
    %322 = arith.mulf %283, %321 : vector<8x128xf32>
    %323 = arith.addf %320, %322 : vector<8x128xf32>
    %324 = vector.broadcast %55 : f32 to vector<8x128xf32>
    %325 = arith.mulf %299, %324 : vector<8x128xf32>
    %326 = arith.addf %323, %325 : vector<8x128xf32>
    %327 = vector.broadcast %93 : f32 to vector<8x128xf32>
    %328 = arith.addf %326, %327 : vector<8x128xf32>
    %cst_44 = arith.constant 3.000000e-02 : f32
    %329 = vector.broadcast %cst_44 : f32 to vector<8x128xf32>
    %330 = arith.mulf %329, %328 : vector<8x128xf32>
    %331 = arith.maximumf %328, %330 : vector<8x128xf32>
    %332 = vector.broadcast %56 : f32 to vector<8x128xf32>
    %333 = arith.mulf %251, %332 : vector<8x128xf32>
    %334 = vector.broadcast %57 : f32 to vector<8x128xf32>
    %335 = arith.mulf %267, %334 : vector<8x128xf32>
    %336 = arith.addf %333, %335 : vector<8x128xf32>
    %337 = vector.broadcast %58 : f32 to vector<8x128xf32>
    %338 = arith.mulf %283, %337 : vector<8x128xf32>
    %339 = arith.addf %336, %338 : vector<8x128xf32>
    %340 = vector.broadcast %59 : f32 to vector<8x128xf32>
    %341 = arith.mulf %299, %340 : vector<8x128xf32>
    %342 = arith.addf %339, %341 : vector<8x128xf32>
    %343 = vector.broadcast %94 : f32 to vector<8x128xf32>
    %344 = arith.addf %342, %343 : vector<8x128xf32>
    %cst_45 = arith.constant 3.000000e-02 : f32
    %345 = vector.broadcast %cst_45 : f32 to vector<8x128xf32>
    %346 = arith.mulf %345, %344 : vector<8x128xf32>
    %347 = arith.maximumf %344, %346 : vector<8x128xf32>
    %348 = vector.broadcast %60 : f32 to vector<8x128xf32>
    %349 = arith.mulf %251, %348 : vector<8x128xf32>
    %350 = vector.broadcast %61 : f32 to vector<8x128xf32>
    %351 = arith.mulf %267, %350 : vector<8x128xf32>
    %352 = arith.addf %349, %351 : vector<8x128xf32>
    %353 = vector.broadcast %62 : f32 to vector<8x128xf32>
    %354 = arith.mulf %283, %353 : vector<8x128xf32>
    %355 = arith.addf %352, %354 : vector<8x128xf32>
    %356 = vector.broadcast %63 : f32 to vector<8x128xf32>
    %357 = arith.mulf %299, %356 : vector<8x128xf32>
    %358 = arith.addf %355, %357 : vector<8x128xf32>
    %359 = vector.broadcast %95 : f32 to vector<8x128xf32>
    %360 = arith.addf %358, %359 : vector<8x128xf32>
    %cst_46 = arith.constant 3.000000e-02 : f32
    %361 = vector.broadcast %cst_46 : f32 to vector<8x128xf32>
    %362 = arith.mulf %361, %360 : vector<8x128xf32>
    %363 = arith.maximumf %360, %362 : vector<8x128xf32>
    %364 = vector.broadcast %64 : f32 to vector<8x128xf32>
    %365 = arith.mulf %315, %364 : vector<8x128xf32>
    %366 = vector.broadcast %65 : f32 to vector<8x128xf32>
    %367 = arith.mulf %331, %366 : vector<8x128xf32>
    %368 = arith.addf %365, %367 : vector<8x128xf32>
    %369 = vector.broadcast %66 : f32 to vector<8x128xf32>
    %370 = arith.mulf %347, %369 : vector<8x128xf32>
    %371 = arith.addf %368, %370 : vector<8x128xf32>
    %372 = vector.broadcast %67 : f32 to vector<8x128xf32>
    %373 = arith.mulf %363, %372 : vector<8x128xf32>
    %374 = arith.addf %371, %373 : vector<8x128xf32>
    %375 = vector.broadcast %96 : f32 to vector<8x128xf32>
    %376 = arith.addf %374, %375 : vector<8x128xf32>
    %377 = vector.broadcast %68 : f32 to vector<8x128xf32>
    %378 = arith.mulf %315, %377 : vector<8x128xf32>
    %379 = vector.broadcast %69 : f32 to vector<8x128xf32>
    %380 = arith.mulf %331, %379 : vector<8x128xf32>
    %381 = arith.addf %378, %380 : vector<8x128xf32>
    %382 = vector.broadcast %70 : f32 to vector<8x128xf32>
    %383 = arith.mulf %347, %382 : vector<8x128xf32>
    %384 = arith.addf %381, %383 : vector<8x128xf32>
    %385 = vector.broadcast %71 : f32 to vector<8x128xf32>
    %386 = arith.mulf %363, %385 : vector<8x128xf32>
    %387 = arith.addf %384, %386 : vector<8x128xf32>
    %388 = vector.broadcast %97 : f32 to vector<8x128xf32>
    %389 = arith.addf %387, %388 : vector<8x128xf32>
    %390 = vector.broadcast %72 : f32 to vector<8x128xf32>
    %391 = arith.mulf %315, %390 : vector<8x128xf32>
    %392 = vector.broadcast %73 : f32 to vector<8x128xf32>
    %393 = arith.mulf %331, %392 : vector<8x128xf32>
    %394 = arith.addf %391, %393 : vector<8x128xf32>
    %395 = vector.broadcast %74 : f32 to vector<8x128xf32>
    %396 = arith.mulf %347, %395 : vector<8x128xf32>
    %397 = arith.addf %394, %396 : vector<8x128xf32>
    %398 = vector.broadcast %75 : f32 to vector<8x128xf32>
    %399 = arith.mulf %363, %398 : vector<8x128xf32>
    %400 = arith.addf %397, %399 : vector<8x128xf32>
    %401 = vector.broadcast %98 : f32 to vector<8x128xf32>
    %402 = arith.addf %400, %401 : vector<8x128xf32>
    %403 = vector.broadcast %76 : f32 to vector<8x128xf32>
    %404 = arith.mulf %315, %403 : vector<8x128xf32>
    %405 = vector.broadcast %77 : f32 to vector<8x128xf32>
    %406 = arith.mulf %331, %405 : vector<8x128xf32>
    %407 = arith.addf %404, %406 : vector<8x128xf32>
    %408 = vector.broadcast %78 : f32 to vector<8x128xf32>
    %409 = arith.mulf %347, %408 : vector<8x128xf32>
    %410 = arith.addf %407, %409 : vector<8x128xf32>
    %411 = vector.broadcast %79 : f32 to vector<8x128xf32>
    %412 = arith.mulf %363, %411 : vector<8x128xf32>
    %413 = arith.addf %410, %412 : vector<8x128xf32>
    %414 = vector.broadcast %99 : f32 to vector<8x128xf32>
    %415 = arith.addf %413, %414 : vector<8x128xf32>
    %c0_47 = arith.constant 0 : index
    %c0_48 = arith.constant 0 : index
    %c0_49 = arith.constant 0 : index
    %416 = vector.load %arg4[%c0_47, %c0_48, %c0_49] : memref<4x8x128xf32, #tpu.memory_space<vmem>>, vector<1x8x128xf32>
    %417 = vector.shape_cast %416 : vector<1x8x128xf32> to vector<8x128xf32>
    %418 = vector.shape_cast %376 : vector<8x128xf32> to vector<1x8x128xf32>
    tpu.vector_store %arg4[%c0_47, %c0_48, %c0_49], %418 {strides = array<i32>} : memref<4x8x128xf32, #tpu.memory_space<vmem>>, vector<1x8x128xf32>,
    %c1_50 = arith.constant 1 : index
    %c0_51 = arith.constant 0 : index
    %c0_52 = arith.constant 0 : index
    %419 = vector.load %arg4[%c1_50, %c0_51, %c0_52] : memref<4x8x128xf32, #tpu.memory_space<vmem>>, vector<1x8x128xf32>
    %420 = vector.shape_cast %419 : vector<1x8x128xf32> to vector<8x128xf32>
    %421 = vector.shape_cast %389 : vector<8x128xf32> to vector<1x8x128xf32>
    tpu.vector_store %arg4[%c1_50, %c0_51, %c0_52], %421 {strides = array<i32>} : memref<4x8x128xf32, #tpu.memory_space<vmem>>, vector<1x8x128xf32>,
    %c2_53 = arith.constant 2 : index
    %c0_54 = arith.constant 0 : index
    %c0_55 = arith.constant 0 : index
    %422 = vector.load %arg4[%c2_53, %c0_54, %c0_55] : memref<4x8x128xf32, #tpu.memory_space<vmem>>, vector<1x8x128xf32>
    %423 = vector.shape_cast %422 : vector<1x8x128xf32> to vector<8x128xf32>
    %424 = vector.shape_cast %402 : vector<8x128xf32> to vector<1x8x128xf32>
    tpu.vector_store %arg4[%c2_53, %c0_54, %c0_55], %424 {strides = array<i32>} : memref<4x8x128xf32, #tpu.memory_space<vmem>>, vector<1x8x128xf32>,
    %c3_56 = arith.constant 3 : index
    %c0_57 = arith.constant 0 : index
    %c0_58 = arith.constant 0 : index
    %425 = vector.load %arg4[%c3_56, %c0_57, %c0_58] : memref<4x8x128xf32, #tpu.memory_space<vmem>>, vector<1x8x128xf32>
    %426 = vector.shape_cast %425 : vector<1x8x128xf32> to vector<8x128xf32>
    %427 = vector.shape_cast %415 : vector<8x128xf32> to vector<1x8x128xf32>
    tpu.vector_store %arg4[%c3_56, %c0_57, %c0_58], %427 {strides = array<i32>} : memref<4x8x128xf32, #tpu.memory_space<vmem>>, vector<1x8x128xf32>,
    return
  }
  func.func @transform_0(%arg0: i32) -> i32 {
    %c0_i32 = arith.constant 0 : i32
    %c0_i32_0 = arith.constant 0 : i32
    return %c0_i32 : i32
  }
  func.func @transform_1(%arg0: i32) -> i32 {
    %c0_i32 = arith.constant 0 : i32
    %c0_i32_0 = arith.constant 0 : i32
    return %c0_i32 : i32
  }
  func.func @transform_2(%arg0: i32) -> (i32, i32, i32) {
    %c0_i32 = arith.constant 0 : i32
    %c0_i32_0 = arith.constant 0 : i32
    %c0_i32_1 = arith.constant 0 : i32
    return %c0_i32, %arg0, %c0_i32_0 : i32, i32, i32
  }
  func.func @transform_3(%arg0: i32) -> (i32, i32, i32) {
    %c0_i32 = arith.constant 0 : i32
    %c0_i32_0 = arith.constant 0 : i32
    %c0_i32_1 = arith.constant 0 : i32
    return %c0_i32, %arg0, %c0_i32_0 : i32, i32, i32
  }
}

</mosaic_0001>

<bundles_post_ra>
// kernel: tpu_custom_call.1
= control target key start
LH: loop header
LB: loop body
LE: loop exit
PB: predicated region body
PF: predicated region fallthrough
CT: control target
= control target key end

     0   :  { %s1039_s0 = inlined_call_operand.hbm [shape: f32[80], index: 0, kind: input, shape index: {}]   ;;  %s1040_s1 = inlined_call_operand.hbm [shape: f32[20], index: 1, kind: input, shape index: {}]   ;;  %s1041_s2 = inlined_call_operand.hbm [shape: f32[4,8,128], index: 2, kind: input, shape index: {}]   ;;  %s1042_s3 = inlined_call_operand.hbm [shape: f32[4,8,128], index: 3, kind: output, shape index: {}]  }
   0x1   :  { %1047 = sst [smem:[#allocation27_spill]] %s1042_s3 }
   0x2   :  { %8 = vsyncpa [#allocation5], 0 }
   0x3   :  { %9 = vsyncpa [#allocation7], 0 }
   0x4   :  { %10 = vsyncpa [#allocation3], 0 }
   0x5   :  { %11 = vsyncpa [#allocation4], 0  ;;  %s17_s14 = sshll.u32 %s1039_s0, 4  ;;  %s26_s17 = sshll.u32 %s1040_s1, 4  ;;  %s18_s14 = int_to_ptr.hbm [resolvable:$true] %s17_s14  ;;  %s27_s17 = int_to_ptr.hbm [resolvable:$true] %s26_s17 }
   0x6   :  { %s667_s18 = smov [#allocation2]   ;;  %s668_s19 = smov [#allocation6]  }
   0x7   :  { %20 = dma.hbm_to_smem %s18_s14, 16, %s667_s18, [#allocation5]  }
   0x8   :  { %29 = dma.hbm_to_smem %s27_s17, 16, %s668_s19, [#allocation7]  }
   0x9   :  { %s34_s22 = sshll.u32 %s1041_s2, 4  ;;  %s669_s23 = smov [#allocation8]   ;;  %s35_s22 = int_to_ptr.hbm [resolvable:$true] %s34_s22 }
   0xa   :  { %s36_s24 = sshll.u32 %s669_s23, 4  ;;  %s1043_s25 = smov 128   ;;  %s37_s24 = int_to_ptr.vmem [resolvable:$true] %s36_s24 }
   0xb   :  { %s1044_s0 = smov 8  }
   0xc   :  { %42 = dma.hbm_to_vmem [thread:$0]  %s35_s22, 512, %s37_s24, [#allocation3], %s1043_s25, %s1043_s25, %s1044_s0  }
   0xd   :  { %659 = dma.done.wait [#allocation5], 16  }
   0xe   :  { %660 = vsyncadd [#allocation5], 4294967280 }
   0xf   :  { %661 = dma.done.wait [#allocation7], 16  }
  0x10   :  { %662 = vsyncadd [#allocation7], 4294967280 }
  0x11   :  { %663 = dma.done.wait [#allocation3], 512  }
  0x12   :  { %664 = vsyncadd [#allocation3], 4294966784 }
  0x13   :  { %55 = sfence }
  0x14   :  { %s705_s1 = sld [smem:[#allocation2]]  ;;  %v156_v0 = vld [vmem:[#allocation8] sm:$0xff]  ;;  %v158_v1 = vld [vmem:[#allocation8 + $0x8] sm:$0xff]  ;;  %v160_v14 = vld [vmem:[#allocation8 + $0x10] sm:$0xff] }
  0x15   :  { %s707_s2 = sld [smem:[#allocation2 + $0x1]]  ;;  %v162_v27 = vld [vmem:[#allocation8 + $0x18] sm:$0xff] }
  0x16   :  { %s709_s26 = sld [smem:[#allocation2 + $0x2]] }
  0x17   :  { %s711_s27 = sld [smem:[#allocation2 + $0x3]] }
  0x18   :  { %s713_s28 = sld [smem:[#allocation2 + $0x4]] }
  0x19   :  { %s715_s29 = sld [smem:[#allocation2 + $0x5]] }
  0x1a   :  { %s717_s30 = sld [smem:[#allocation2 + $0x6]]  ;;  %v163_v2 = vstv %s705_s1 }
  0x1b   :  { %s719_s4 = sld [smem:[#allocation2 + $0x7]]  ;;  %v165_v3 = vstv %s707_s2  ;;  %v164_v10 = vmul.f32 %v163_v2, %v156_v0 }
  0x1c   :  { %s721_s5 = sld [smem:[#allocation2 + $0x8]]  ;;  %v166_v11 = vmul.f32 %v165_v3, %v158_v1  ;;  %v168_v15 = vstv %s709_s26 }
  0x1d   :  { %s723_s6 = sld [smem:[#allocation2 + $0x9]]  ;;  %v169_v24 = vmul.f32 %v168_v15, %v160_v14  ;;  %v171_v28 = vstv %s711_s27 }
  0x1e   :  { %s725_s7 = sld [smem:[#allocation2 + $0xa]]  ;;  %v178_v4 = vstv %s713_s28  ;;  %v167_v23 = vadd.f32 %v166_v11, %v164_v10  ;;  %v172_v37 = vmul.f32 %v171_v28, %v162_v27 }
  0x1f   :  { %s727_s8 = sld [smem:[#allocation2 + $0xb]]  ;;  %v180_v5 = vstv %s715_s29  ;;  %v179_v12 = vmul.f32 %v178_v4, %v156_v0 }
  0x20   :  { %s729_s9 = sld [smem:[#allocation2 + $0xc]]  ;;  %v181_v13 = vmul.f32 %v180_v5, %v158_v1  ;;  %v183_v16 = vstv %s717_s30  ;;  %v170_v36 = vadd.f32 %v169_v24, %v167_v23 }
  0x21   :  { %s731_s10 = sld [smem:[#allocation2 + $0xd]]  ;;  %v184_v26 = vmul.f32 %v183_v16, %v160_v14  ;;  %v186_v29 = vstv %s719_s4 }
  0x22   :  { %s733_s11 = sld [smem:[#allocation2 + $0xe]]  ;;  %v193_v6 = vstv %s721_s5  ;;  %v182_v25 = vadd.f32 %v181_v13, %v179_v12  ;;  %v187_v39 = vmul.f32 %v186_v29, %v162_v27  ;;  %v173_v44 = vadd.f32 %v172_v37, %v170_v36 }
  0x23   :  { %s735_s12 = sld [smem:[#allocation2 + $0xf]]  ;;  %v195_v7 = vstv %s723_s6  ;;  %v194_v17 = vmul.f32 %v193_v6, %v156_v0 }
  0x24   :  { %s737_s13 = sld [smem:[#allocation2 + $0x10]]  ;;  %v196_v18 = vmul.f32 %v195_v7, %v158_v1  ;;  %v198_v19 = vstv %s725_s7  ;;  %v185_v38 = vadd.f32 %v184_v26, %v182_v25 }
  0x25   :  { %s739_s14 = sld [smem:[#allocation2 + $0x11]]  ;;  %v199_v31 = vmul.f32 %v198_v19, %v160_v14  ;;  %v201_v32 = vstv %s727_s8 }
  0x26   :  { %s741_s15 = sld [smem:[#allocation2 + $0x12]]  ;;  %v208_v8 = vstv %s729_s9  ;;  %v197_v30 = vadd.f32 %v196_v18, %v194_v17  ;;  %v202_v41 = vmul.f32 %v201_v32, %v162_v27  ;;  %v188_v45 = vadd.f32 %v187_v39, %v185_v38 }
  0x27   :  { %s743_s16 = sld [smem:[#allocation2 + $0x13]]  ;;  %v210_v9 = vstv %s731_s10  ;;  %v209_v20 = vmul.f32 %v208_v8, %v156_v0 }
  0x28   :  { %s745_s17 = sld [smem:[#allocation2 + $0x14]]  ;;  %v211_v21 = vmul.f32 %v210_v9, %v158_v1  ;;  %v213_v22 = vstv %s733_s11  ;;  %v200_v40 = vadd.f32 %v199_v31, %v197_v30 }
  0x29   :  { %s747_s18 = sld [smem:[#allocation2 + $0x15]]  ;;  %v214_v34 = vmul.f32 %v213_v22, %v160_v14  ;;  %v216_v35 = vstv %s735_s12 }
  0x2a   :  { %s749_s19 = sld [smem:[#allocation2 + $0x16]]  ;;  %v212_v33 = vadd.f32 %v211_v21, %v209_v20  ;;  %v217_v43 = vmul.f32 %v216_v35, %v162_v27  ;;  %v203_v46 = vadd.f32 %v202_v41, %v200_v40  ;;  %v223_v47 = vstv %s737_s13 }
  0x2b   :  { %s751_s20 = sld [smem:[#allocation2 + $0x17]]  ;;  %v225_v48 = vstv %s739_s14 }
  0x2c   :  { %s753_s21 = sld [smem:[#allocation2 + $0x18]]  ;;  %v215_v42 = vadd.f32 %v214_v34, %v212_v33  ;;  %v228_v51 = vstv %s741_s15 }
  0x2d   :  { %1048 = sst [smem:[#allocation14_spill]] %s743_s16 }
  0x2e   :  { %s755_s22 = sld [smem:[#allocation2 + $0x19]]  ;;  %v238_v49 = vstv %s745_s17  ;;  %v218_v50 = vadd.f32 %v217_v43, %v215_v42 }
  0x2f   :  { %s757_s23 = sld [smem:[#allocation2 + $0x1a]]  ;;  %v240_v52 = vstv %s747_s18 }
  0x30   :  { %s759_s24 = sld [smem:[#allocation2 + $0x1b]]  ;;  %v243_v53 = vstv %s749_s19 }
  0x31   :  { %1049 = sst [smem:[#allocation15_spill]] %s751_s20 }
  0x32   :  { %1050 = sst [smem:[#allocation16_spill]] %s753_s21 }
  0x33   :  { %s761_s25 = sld [smem:[#allocation2 + $0x1c]] }
  0x34   :  { %1051 = sst [smem:[#allocation17_spill]] %s755_s22 }
  0x35   :  { %1052 = sst [smem:[#allocation18_spill]] %s757_s23 }
  0x36   :  { %s763_s0 = sld [smem:[#allocation2 + $0x1d]]  ;;  %v261_v0 = vstv %s759_s24 }
  0x37   :  { %s765_s3 = sld [smem:[#allocation2 + $0x1e]] }
  0x38   :  { %s767_s20 = sld [smem:[#allocation2 + $0x1f]] }
  0x39   :  { %s769_s21 = sld [smem:[#allocation2 + $0x20]]  ;;  %v268_v60 = vstv %s761_s25 }
  0x3a   :  { %s771_s22 = sld [smem:[#allocation2 + $0x21]] }
  0x3b   :  { %s773_s16 = sld [smem:[#allocation2 + $0x22]] }
  0x3c   :  { %s775_s23 = sld [smem:[#allocation2 + $0x23]]  ;;  %v270_v61 = vstv %s763_s0 }
  0x3d   :  { %1053 = sst [smem:[#allocation19_spill]] %s765_s3 }
  0x3e   :  { %s781_s3 = sld [smem:[#allocation2 + $0x24]]  ;;  %v276_v4 = vstv %s767_s20 }
  0x3f   :  { %1054 = sst [smem:[#allocation20_spill]] %s769_s21 }
  0x40   :  { %s785_s21 = sld [smem:[#allocation2 + $0x25]]  ;;  %v285_v9 = vstv %s771_s22 }
  0x41   :  { %1055 = sst [smem:[#allocation21_spill]] %s773_s16 }
  0x42   :  { %s789_s16 = sld [smem:[#allocation2 + $0x26]] }
  0x43   :  { %s791_s1 = sld [smem:[#allocation2 + $0x27]] }
  0x44   :  { %s795_s2 = sld [smem:[#allocation2 + $0x28]]  ;;  %v298_v12 = vstv %s781_s3 }
  0x45   :  { %s798_s28 = sld [smem:[#allocation2 + $0x29]] }
  0x46   :  { %s801_s29 = sld [smem:[#allocation2 + $0x2a]]  ;;  %v300_v13 = vstv %s785_s21 }
  0x47   :  { %s803_s26 = sld [smem:[#allocation2 + $0x2b]] }
  0x48   :  { %s807_s30 = sld [smem:[#allocation2 + $0x2c]]  ;;  %v303_v17 = vstv %s789_s16 }
  0x49   :  { %s810_s5 = sld [smem:[#allocation2 + $0x2d]] }
  0x4a   :  { %s813_s6 = sld [smem:[#allocation2 + $0x2e]]  ;;  %v313_v20 = vstv %s795_s2 }
  0x4b   :  { %s815_s27 = sld [smem:[#allocation2 + $0x2f]]  ;;  %v315_v21 = vstv %s798_s28 }
  0x4c   :  { %s136_s4 = sld [smem:[#allocation6]] }
  0x4d   :  { %1056 = sst [smem:[#allocation22_spill]] %s803_s26 }
  0x4e   :  { %1057 = sst [smem:[#allocation23_spill]] %s807_s30 }
  0x4f   :  { %1058 = sst [smem:[#allocation24_spill]] %s810_s5 }
  0x50   :  { %1059 = sst [smem:[#allocation25_spill]] %s813_s6 }
  0x51   :  { %1060 = sst [smem:[#allocation26_spill]] %s815_s27 }
  0x52   :  { %s1061_s7 = sld [smem:[#allocation14_spill]]  ;;  %v174_v58 = vstv %s136_s4 }
  0x53   :  { %s562_s8 = sld [smem:[#allocation6 + $0x1]]  ;;  %v175_v62 = vadd.f32 %v174_v58, %v173_v44 }
  0x54   :  { %s1062_s9 = sld [smem:[#allocation15_spill]] }
  0x55   :  { %s817_s10 = sld [smem:[#allocation6 + $0x2]]  ;;  %v176_v6 = vmul.f32 0.03, %v175_v62 }
  0x56   :  { %s1063_s11 = sld [smem:[#allocation16_spill]] }
  0x57   :  { %s1064_s12 = sld [smem:[#allocation17_spill]]  ;;  %v177_v14 = vmax.f32 %v175_v62, %v176_v6 }
  0x58   :  { %s819_s6 = sld [smem:[#allocation6 + $0x3]]  ;;  %v231_v54 = vstv %s1061_s7 }
  0x59   :  { %s1065_s27 = sld [smem:[#allocation18_spill]]  ;;  %v189_v63 = vstv %s562_s8  ;;  %v224_v23 = vmul.f32 %v223_v47, %v177_v14  ;;  %v239_v24 = vmul.f32 %v238_v49, %v177_v14  ;;  %v269_v33 = vmul.f32 %v268_v60, %v177_v14 }
  0x5a   :  { %s824_s26 = sld [smem:[#allocation2 + $0x30]]  ;;  %v246_v55 = vstv %s1062_s9  ;;  %v190_v2 = vadd.f32 %v189_v63, %v188_v45  ;;  %v291_v45 = vstv %s775_s23 }
  0x5b   :  { %s1066_s5 = sld [smem:[#allocation19_spill]]  ;;  %v204_v3 = vstv %s817_s10 }
  0x5c   :  { %s829_s30 = sld [smem:[#allocation2 + $0x31]]  ;;  %v253_v56 = vstv %s1063_s11  ;;  %v205_v7 = vadd.f32 %v204_v3, %v203_v46  ;;  %v191_v10 = vmul.f32 0.03, %v190_v2 }
  0x5d   :  { %s1067_s13 = sld [smem:[#allocation20_spill]]  ;;  %v255_v57 = vstv %s1064_s12  ;;  %v254_v25 = vmul.f32 %v253_v56, %v177_v14  ;;  %v318_v56 = vstv %s801_s29 }
  0x5e   :  { %s835_s14 = sld [smem:[#allocation2 + $0x32]]  ;;  %v219_v8 = vstv %s819_s6  ;;  %v206_v15 = vmul.f32 0.03, %v205_v7  ;;  %v192_v18 = vmax.f32 %v190_v2, %v191_v10 }
  0x5f   :  { %v258_v59 = vstv %s1065_s27  ;;  %s840_s15 = sld [smem:[#allocation2 + $0x33]]  ;;  %v220_v11 = vadd.f32 %v219_v8, %v218_v50 }
  0x60   :  { %s844_s17 = sld [smem:[#allocation2 + $0x34]]  ;;  %v207_v22 = vmax.f32 %v205_v7, %v206_v15  ;;  %v226_v27 = vmul.f32 %v225_v48, %v192_v18  ;;  %v241_v28 = vmul.f32 %v240_v52, %v192_v18  ;;  %v256_v29 = vmul.f32 %v255_v57, %v192_v18 }
  0x61   :  { %v273_v1 = vstv %s1066_s5  ;;  %s1068_s18 = sld [smem:[#allocation21_spill]]  ;;  %v221_v19 = vmul.f32 0.03, %v220_v11  ;;  %v271_v40 = vmul.f32 %v270_v61, %v192_v18  ;;  %v343_v6 = vstv %s824_s26 }
  0x62   :  { %s849_s19 = sld [smem:[#allocation2 + $0x35]]  ;;  %v229_v30 = vmul.f32 %v228_v51, %v207_v22  ;;  %v244_v31 = vmul.f32 %v243_v53, %v207_v22  ;;  %v259_v32 = vmul.f32 %v258_v59, %v207_v22  ;;  %v227_v34 = vadd.f32 %v226_v27, %v224_v23 }
  0x63   :  { %v283_v5 = vstv %s1067_s13  ;;  %s853_s25 = sld [smem:[#allocation6 + $0x4]]  ;;  %v222_v26 = vmax.f32 %v220_v11, %v221_v19  ;;  %v242_v36 = vadd.f32 %v241_v28, %v239_v24  ;;  %v257_v38 = vadd.f32 %v256_v29, %v254_v25 }
  0x64   :  { %s857_s0 = sld [smem:[#allocation6 + $0x5]]  ;;  %v274_v41 = vmul.f32 %v273_v1, %v207_v22  ;;  %v230_v42 = vadd.f32 %v229_v30, %v227_v34  ;;  %v272_v48 = vadd.f32 %v271_v40, %v269_v33  ;;  %v306_v53 = vstv %s791_s1 }
  0x65   :  { %s861_s20 = sld [smem:[#allocation6 + $0x6]]  ;;  %v232_v35 = vmul.f32 %v231_v54, %v222_v26  ;;  %v247_v37 = vmul.f32 %v246_v55, %v222_v26  ;;  %v262_v39 = vmul.f32 %v261_v0, %v222_v26  ;;  %v245_v44 = vadd.f32 %v244_v31, %v242_v36 }
  0x66   :  { %s865_s24 = sld [smem:[#allocation2 + $0x36]]  ;;  %v260_v47 = vadd.f32 %v259_v32, %v257_v38  ;;  %v277_v49 = vmul.f32 %v276_v4, %v222_v26  ;;  %v275_v55 = vadd.f32 %v274_v41, %v272_v48  ;;  %v345_v10 = vstv %s829_s30 }
  0x67   :  { %v288_v16 = vstv %s1068_s18  ;;  %s867_s5 = sld [smem:[#allocation6 + $0x7]]  ;;  %v233_v50 = vadd.f32 %v232_v35, %v230_v42  ;;  %v248_v51 = vadd.f32 %v247_v37, %v245_v44  ;;  %v348_v11 = vstv %s835_s14 }
  0x68   :  { %s869_s6 = sld [smem:[#allocation2 + $0x37]]  ;;  %v263_v54 = vadd.f32 %v262_v39, %v260_v47  ;;  %v278_v63 = vadd.f32 %v277_v49, %v275_v55  ;;  %v358_v19 = vstv %s844_s17  ;;  %v351_v41 = vstv %s840_s15 }
  0x69   :  { %s871_s27 = sld [smem:[#allocation2 + $0x38]]  ;;  %v234_v43 = vstv %s853_s25  ;;  %v360_v47 = vstv %s849_s19 }
  0x6a   :  { %s873_s4 = sld [smem:[#allocation6 + $0x8]]  ;;  %v249_v46 = vstv %s857_s0  ;;  %v235_v58 = vadd.f32 %v234_v43, %v233_v50 }
  0x6b   :  { %s875_s7 = sld [smem:[#allocation6 + $0x9]]  ;;  %v264_v52 = vstv %s861_s20  ;;  %v250_v59 = vadd.f32 %v249_v46, %v248_v51 }
  0x6c   :  { %s1070_s8 = sld [smem:[#allocation23_spill]]  ;;  %v265_v62 = vadd.f32 %v264_v52, %v263_v54  ;;  %v236_v2 = vmul.f32 0.03, %v235_v58  ;;  %v363_v48 = vstv %s865_s24 }
  0x6d   :  { %s879_s9 = sld [smem:[#allocation6 + $0xa]]  ;;  %v279_v60 = vstv %s867_s5  ;;  %v251_v3 = vmul.f32 0.03, %v250_v59 }
  0x6e   :  { %s1071_s10 = sld [smem:[#allocation24_spill]]  ;;  %v266_v7 = vmul.f32 0.03, %v265_v62  ;;  %v280_v8 = vadd.f32 %v279_v60, %v278_v63  ;;  %v237_v14 = vmax.f32 %v235_v58, %v236_v2  ;;  %v366_v49 = vstv %s869_s6 }
  0x6f   :  { %1069 = sst [smem:[#allocation14_spill]] %s871_s27  ;;  %v252_v15 = vmax.f32 %v250_v59, %v251_v3 }
  0x70   :  { %s882_s11 = sld [smem:[#allocation2 + $0x39]]  ;;  %v294_v18 = vstv %s873_s4  ;;  %v267_v22 = vmax.f32 %v265_v62, %v266_v7  ;;  %v281_v23 = vmul.f32 0.03, %v280_v8  ;;  %v284_v26 = vmul.f32 %v283_v5, %v237_v14 }
  0x71   :  { %s1073_s12 = sld [smem:[#allocation22_spill]]  ;;  %v309_v24 = vstv %s875_s7  ;;  %v286_v27 = vmul.f32 %v285_v9, %v252_v15  ;;  %v299_v28 = vmul.f32 %v298_v12, %v237_v14  ;;  %v301_v29 = vmul.f32 %v300_v13, %v252_v15 }
  0x72   :  { %s1074_s27 = sld [smem:[#allocation25_spill]]  ;;  %v328_v57 = vstv %s1070_s8  ;;  %v282_v30 = vmax.f32 %v280_v8, %v281_v23  ;;  %v289_v31 = vmul.f32 %v288_v16, %v267_v22  ;;  %v304_v32 = vmul.f32 %v303_v17, %v267_v22 }
  0x73   :  { %s886_s25 = sld [smem:[#allocation2 + $0x3a]]  ;;  %v324_v25 = vstv %s879_s9  ;;  %v314_v33 = vmul.f32 %v313_v20, %v237_v14  ;;  %v287_v34 = vadd.f32 %v286_v27, %v284_v26  ;;  %v302_v35 = vadd.f32 %v301_v29, %v299_v28 }
  0x74   :  { %s1075_s23 = sld [smem:[#allocation26_spill]]  ;;  %v330_v61 = vstv %s1071_s10  ;;  %v316_v5 = vmul.f32 %v315_v21, %v252_v15  ;;  %v319_v9 = vmul.f32 %v318_v56, %v267_v22  ;;  %v292_v12 = vmul.f32 %v291_v45, %v282_v30 }
  0x75   :  { %s890_s0 = sld [smem:[#allocation2 + $0x3b]]  ;;  %v307_v13 = vmul.f32 %v306_v53, %v282_v30  ;;  %v329_v37 = vmul.f32 %v328_v57, %v237_v14  ;;  %v290_v16 = vadd.f32 %v289_v31, %v287_v34  ;;  %v305_v17 = vadd.f32 %v304_v32, %v302_v35 }
  0x76   :  { %1072 = sst [smem:[#allocation15_spill]] %s882_s11  ;;  %v317_v20 = vadd.f32 %v316_v5, %v314_v33  ;;  %v331_v38 = vmul.f32 %v330_v61, %v252_v15 }
  0x77   :  { %s894_s11 = sld [smem:[#allocation2 + $0x3c]]  ;;  %v321_v0 = vstv %s1073_s12  ;;  %v293_v42 = vadd.f32 %v292_v12, %v290_v16  ;;  %v308_v43 = vadd.f32 %v307_v13, %v305_v17 }
  0x78   :  { %v333_v1 = vstv %s1074_s27  ;;  %s898_s1 = sld [smem:[#allocation2 + $0x3d]]  ;;  %v322_v36 = vmul.f32 %v321_v0, %v282_v30  ;;  %v320_v44 = vadd.f32 %v319_v9, %v317_v20  ;;  %v332_v45 = vadd.f32 %v331_v38, %v329_v37 }
  0x79   :  { %s902_s29 = sld [smem:[#allocation6 + $0xb]]  ;;  %v334_v21 = vmul.f32 %v333_v1, %v267_v22  ;;  %v295_v50 = vadd.f32 %v294_v18, %v293_v42  ;;  %v310_v51 = vadd.f32 %v309_v24, %v308_v43  ;;  %v378_v57 = vstv %s886_s25 }
  0x7a   :  { %v336_v4 = vstv %s1075_s23  ;;  %s906_s20 = sld [smem:[#allocation2 + $0x3e]]  ;;  %v323_v52 = vadd.f32 %v322_v36, %v320_v44 }
  0x7b   :  { %s910_s5 = sld [smem:[#allocation6 + $0xc]]  ;;  %v337_v39 = vmul.f32 %v336_v4, %v282_v30  ;;  %v335_v53 = vadd.f32 %v334_v21, %v332_v45  ;;  %v296_v58 = vmul.f32 0.03, %v295_v50  ;;  %v311_v59 = vmul.f32 0.03, %v310_v51 }
  0x7c   :  { %s914_s27 = sld [smem:[#allocation2 + $0x3f]]  ;;  %v325_v60 = vadd.f32 %v324_v25, %v323_v52  ;;  %v381_v62 = vstv %s890_s0  ;;  %s672_s0 = smov [#allocation9]  }
  0x7d   :  { %s924_s4 = sld [smem:[#allocation6 + $0xd]]  ;;  %v338_v61 = vadd.f32 %v337_v39, %v335_v53  ;;  %v388_v0 = vstv %s894_s11  ;;  %v297_v2 = vmax.f32 %v295_v50, %v296_v58  ;;  %v312_v3 = vmax.f32 %v310_v51, %v311_v59 }
  0x7e   :  { %s932_s7 = sld [smem:[#allocation2 + $0x40]]  ;;  %v390_v1 = vstv %s898_s1  ;;  %v326_v4 = vmul.f32 0.03, %v325_v60  ;;  %s466_s1 = sshll.u32 %s672_s0, 4  ;;  %s467_s1 = int_to_ptr.vmem [resolvable:$true] %s466_s1 }
  0x7f   :  { %s936_s3 = sld [smem:[#allocation6 + $0xe]]  ;;  %v339_v40 = vstv %s902_s29  ;;  %v344_v24 = vmul.f32 %v343_v6, %v297_v2  ;;  %v346_v25 = vmul.f32 %v345_v10, %v312_v3  ;;  %v359_v26 = vmul.f32 %v358_v19, %v297_v2 }
  0x80   :  { %s938_s21 = sld [smem:[#allocation2 + $0x41]]  ;;  %v340_v7 = vadd.f32 %v339_v40, %v338_v61  ;;  %v393_v8 = vstv %s906_s20  ;;  %v327_v22 = vmax.f32 %v325_v60, %v326_v4  ;;  %v361_v27 = vmul.f32 %v360_v47, %v312_v3 }
  0x81   :  { %s940_s16 = sld [smem:[#allocation6 + $0xf]]  ;;  %v354_v46 = vstv %s910_s5  ;;  %v347_v31 = vadd.f32 %v346_v25, %v344_v24  ;;  %v389_v19 = vmul.f32 %v388_v0, %v297_v2  ;;  %v391_v36 = vmul.f32 %v390_v1, %v312_v3 }
  0x82   :  { %s944_s22 = sld [smem:[#allocation2 + $0x42]]  ;;  %v396_v14 = vstv %s914_s27  ;;  %v341_v23 = vmul.f32 0.03, %v340_v7  ;;  %v349_v32 = vmul.f32 %v348_v11, %v327_v22  ;;  %v364_v33 = vmul.f32 %v363_v48, %v327_v22 }
  0x83   :  { %s1076_s2 = sld [smem:[#allocation14_spill]]  ;;  %v369_v54 = vstv %s924_s4  ;;  %v362_v6 = vadd.f32 %v361_v27, %v359_v26  ;;  %v379_v34 = vmul.f32 %v378_v57, %v327_v22  ;;  %v394_v37 = vmul.f32 %v393_v8, %v327_v22  ;;  %s1079_s4 = smov 8  }
  0x84   :  { %s1077_s28 = sld [smem:[#allocation15_spill]]  ;;  %v403_v18 = vstv %s932_s7  ;;  %v342_v30 = vmax.f32 %v340_v7, %v341_v23  ;;  %v350_v35 = vadd.f32 %v349_v32, %v347_v31  ;;  %v392_v40 = vadd.f32 %v391_v36, %v389_v19  ;;  %s1080_s7 = smov 128  }
  0x85   :  { %s946_s13 = sld [smem:[#allocation2 + $0x43]]  ;;  %v384_v63 = vstv %s936_s3  ;;  %v365_v11 = vadd.f32 %v364_v33, %v362_v6 }
  0x86   :  { %s952_s18 = sld [smem:[#allocation2 + $0x44]]  ;;  %v352_v5 = vmul.f32 %v351_v41, %v342_v30  ;;  %v367_v9 = vmul.f32 %v366_v49, %v342_v30  ;;  %v382_v12 = vmul.f32 %v381_v62, %v342_v30  ;;  %v405_v17 = vstv %s938_s21 }
  0x87   :  { %s954_s8 = sld [smem:[#allocation2 + $0x45]]  ;;  %v399_v15 = vstv %s940_s16  ;;  %v397_v41 = vmul.f32 %v396_v14, %v342_v30  ;;  %v395_v49 = vadd.f32 %v394_v37, %v392_v40 }
  0x88   :  { %s960_s9 = sld [smem:[#allocation2 + $0x46]]  ;;  %v353_v16 = vadd.f32 %v352_v5, %v350_v35  ;;  %v408_v20 = vstv %s944_s22  ;;  %v368_v21 = vadd.f32 %v367_v9, %v365_v11 }
  0x89   :  { %v373_v55 = vstv %s1076_s2  ;;  %s962_s19 = sld [smem:[#allocation2 + $0x47]]  ;;  %v398_v57 = vadd.f32 %v397_v41, %v395_v49 }
  0x8a   :  { %v375_v56 = vstv %s1077_s28  ;;  %s968_s24 = sld [smem:[#allocation2 + $0x48]]  ;;  %v374_v28 = vmul.f32 %v373_v55, %v297_v2  ;;  %v355_v42 = vadd.f32 %v354_v46, %v353_v16  ;;  %v370_v47 = vadd.f32 %v369_v54, %v368_v21 }
  0x8b   :  { %s970_s6 = sld [smem:[#allocation2 + $0x49]]  ;;  %v376_v29 = vmul.f32 %v375_v56, %v312_v3  ;;  %v411_v38 = vstv %s946_s13  ;;  %v400_v0 = vadd.f32 %v399_v15, %v398_v57 }
  0x8c   :  { %s976_s10 = sld [smem:[#allocation2 + $0x4a]]  ;;  %v416_v43 = vstv %s952_s18  ;;  %v356_v51 = vmul.f32 0.03, %v355_v42  ;;  %v371_v55 = vmul.f32 0.03, %v370_v47 }
  0x8d   :  { %s982_s11 = sld [smem:[#allocation2 + $0x4b]]  ;;  %v377_v10 = vadd.f32 %v376_v29, %v374_v28  ;;  %v418_v44 = vstv %s954_s8  ;;  %v401_v8 = vmul.f32 0.03, %v400_v0 }
  0x8e   :  { %s986_s12 = sld [smem:[#allocation2 + $0x4c]]  ;;  %v421_v45 = vstv %s960_s9  ;;  %v357_v54 = vmax.f32 %v355_v42, %v356_v51  ;;  %v372_v62 = vmax.f32 %v370_v47, %v371_v55 }
  0x8f   :  { %s990_s25 = sld [smem:[#allocation2 + $0x4d]]  ;;  %v380_v13 = vadd.f32 %v379_v34, %v377_v10  ;;  %v424_v50 = vstv %s962_s19  ;;  %v402_v28 = vmax.f32 %v400_v0, %v401_v8 }
  0x90   :  { %s992_s26 = sld [smem:[#allocation2 + $0x4e]]  ;;  %v429_v52 = vstv %s968_s24  ;;  %v404_v2 = vmul.f32 %v403_v18, %v357_v54  ;;  %v417_v3 = vmul.f32 %v416_v43, %v357_v54  ;;  %v406_v14 = vmul.f32 %v405_v17, %v372_v62 }
  0x91   :  { %s996_s30 = sld [smem:[#allocation2 + $0x4f]]  ;;  %v383_v39 = vadd.f32 %v382_v12, %v380_v13  ;;  %v431_v46 = vstv %s970_s6  ;;  %v430_v4 = vmul.f32 %v429_v52, %v357_v54  ;;  %v419_v23 = vmul.f32 %v418_v44, %v372_v62 }
  0x92   :  { %s1006_s14 = sld [smem:[#allocation6 + $0x10]]  ;;  %v434_v53 = vstv %s976_s10  ;;  %v432_v25 = vmul.f32 %v431_v46, %v372_v62  ;;  %v407_v29 = vadd.f32 %v406_v14, %v404_v2  ;;  %v412_v10 = vmul.f32 %v411_v38, %v402_v28 }
  0x93   :  { %v385_v48 = vadd.f32 %v384_v63, %v383_v39  ;;  %s1011_s15 = sld [smem:[#allocation6 + $0x11]]  ;;  %v437_v59 = vstv %s982_s11  ;;  %v420_v30 = vadd.f32 %v419_v23, %v417_v3  ;;  %v425_v19 = vmul.f32 %v424_v50, %v402_v28 }
  0x94   :  { %v442_v58 = vstv %s986_s12  ;;  %s1017_s17 = sld [smem:[#allocation6 + $0x12]]  ;;  %v433_v32 = vadd.f32 %v432_v25, %v430_v4  ;;  %v438_v5 = vmul.f32 %v437_v59, %v402_v28 }
  0x95   :  { %v386_v56 = vmul.f32 0.03, %v385_v48  ;;  %v444_v60 = vstv %s990_s25  ;;  %s1022_s23 = sld [smem:[#allocation6 + $0x13]]  ;;  %v443_v7 = vmul.f32 %v442_v58, %v357_v54 }
  0x96   :  { %v447_v61 = vstv %s992_s26  ;;  %v445_v27 = vmul.f32 %v444_v60, %v372_v62  ;;  %s1078_s5 = sld [smem:[#allocation27_spill]] }
  0x97   :  { %v387_v63 = vmax.f32 %v385_v48, %v386_v56  ;;  %v450_v1 = vstv %s996_s30 }
  0x98   :  { %v414_v18 = vstv %s1006_s14  ;;  %v446_v33 = vadd.f32 %v445_v27, %v443_v7  ;;  %v451_v12 = vmul.f32 %v450_v1, %v402_v28 }
  0x99   :  { %v409_v22 = vmul.f32 %v408_v20, %v387_v63  ;;  %v422_v24 = vmul.f32 %v421_v45, %v387_v63  ;;  %v435_v26 = vmul.f32 %v434_v53, %v387_v63  ;;  %v448_v15 = vmul.f32 %v447_v61, %v387_v63 }
  0x9a   :  { %v427_v31 = vstv %s1011_s15  ;;  %v440_v36 = vstv %s1017_s17 }
  0x9b   :  { %v410_v6 = vadd.f32 %v409_v22, %v407_v29  ;;  %v423_v34 = vadd.f32 %v422_v24, %v420_v30  ;;  %v436_v35 = vadd.f32 %v435_v26, %v433_v32  ;;  %v449_v9 = vadd.f32 %v448_v15, %v446_v33 }
  0x9c   :  { %v453_v37 = vstv %s1022_s23  ;;  %s468_s27 = sshll.u32 %s1078_s5, 4  ;;  %s469_s27 = int_to_ptr.hbm [resolvable:$true] %s468_s27 }
  0x9d   :  { %v413_v11 = vadd.f32 %v412_v10, %v410_v6  ;;  %v426_v13 = vadd.f32 %v425_v19, %v423_v34  ;;  %v439_v16 = vadd.f32 %v438_v5, %v436_v35  ;;  %v452_v17 = vadd.f32 %v451_v12, %v449_v9 }
  0x9f   :  { %v415_v20 = vadd.f32 %v414_v18, %v413_v11  ;;  %v428_v21 = vadd.f32 %v427_v31, %v426_v13  ;;  %v441_v38 = vadd.f32 %v440_v36, %v439_v16  ;;  %v454_v39 = vadd.f32 %v453_v37, %v452_v17 }
  0xa1   :  { %455 = vst [vmem:[#allocation9] sm:$0xff] %v415_v20 }
  0xa2   :  { %457 = vst [vmem:[#allocation9 + $0x8] sm:$0xff] %v428_v21 }
  0xa3   :  { %459 = vst [vmem:[#allocation9 + $0x10] sm:$0xff] %v441_v38 }
  0xa4   :  { %461 = vst [vmem:[#allocation9 + $0x18] sm:$0xff] %v454_v39 }
  0xa5   :  { %474 = dma.vmem_to_hbm [thread:$0]  %s467_s1, 512, %s469_s27, [#allocation4], %s1080_s7, %s1080_s7, %s1079_s4  }
  0xa6   :  { %665 = dma.done.wait [#allocation4], 512  }
  0xa7   :  { %666 = vsyncadd [#allocation4], 4294966784 }
  0xa8   :  { %479 = vsyncpa [#allocation3], 1 }
  0xa9   :  { %480 = vsyncpa [#allocation4], 1 }
  0xaa   :  { %481 = vsyncpa [#allocation5], 1 }
  0xab   :  { %482 = vsyncpa [#allocation7], 1 }

</bundles_post_ra>
